<compile_context>
chip_gen: v6e
topology: v6e:2x2x1
jax: 0.10.0
libtpu: 0.0.40
codegen_flags: <defaults>
</compile_context>

<pallas_src>
import functools

import jax
import jax.numpy as jnp
import numpy as np
from jax import lax
from jax.experimental import pallas as pl
from jax.experimental.pallas import tpu as pltpu


def _round_up(x: int, m: int) -> int:
    return ((x + m - 1) // m) * m


def _make_dense_head_kernel(layer_num: int):
    """Fused kernel: layer_num x (Linear -> LayerNorm -> SiLU) -> Linear (padded head)."""

    def kernel(x_ref, *refs):
        w_refs = refs[:layer_num]              # per-layer weights [in, out]
        vecs_ref = refs[layer_num]             # (layer_num, 3, units): bias, ln_gamma, ln_beta
        wm_ref = refs[layer_num + 1]           # (units, out_pad)
        bm_ref = refs[layer_num + 2]           # (1, out_pad)
        out_ref = refs[layer_num + 3]

        h = x_ref[...].astype(jnp.float32)
        for l in range(layer_num):
            w = w_refs[l][...]
            # Linear on the MXU; operands stream in the weight dtype (bf16 or f32),
            # accumulation is always f32.
            y = jnp.dot(h.astype(w.dtype), w, preferred_element_type=jnp.float32)
            vec = vecs_ref[l].astype(jnp.float32)          # (3, units)
            b = vec[0:1, :]
            g = vec[1:2, :]
            beta = vec[2:3, :]
            y = y + b
            # LayerNorm (biased variance, eps=1e-5 like torch.nn.LayerNorm), f32 math.
            # Single-pass variance E[y^2] - mu^2 (VALU relief); clamp for numerical safety.
            mu = jnp.mean(y, axis=-1, keepdims=True)
            var = jnp.maximum(jnp.mean(y * y, axis=-1, keepdims=True) - mu * mu, 0.0)
            y = (y - mu) * lax.rsqrt(var + 1e-5) * g + beta
            # SiLU (sigmoid lands on the EUP slot), f32.
            h = y * jax.nn.sigmoid(y)

        wm = wm_ref[...]
        mean = jnp.dot(h.astype(wm.dtype), wm, preferred_element_type=jnp.float32)
        mean = mean + bm_ref[...].astype(jnp.float32)
        out_ref[...] = mean.astype(out_ref.dtype)

    return kernel


def dense_head_forward(features, params, *, layer_num, out_dim, batch_tile=None):
    """features: [B, inp_dim] f32. params: (W_0..W_{L-1}, vecs, wm_pad, bm_pad).

    Returns (mean [B, out_dim] f32, std scalar 1.0).
    """
    weights = params[:layer_num]
    vecs = params[layer_num]
    wm = params[layer_num + 1]
    bm = params[layer_num + 2]

    b, inp_dim = features.shape
    units = wm.shape[0]
    out_pad = wm.shape[1]

    # Batch tile: multiple of 8 (f32 sublanes). For production batches this grows up to
    # 256 rows to keep the MXU fed (128 already saturates v5e's 128x128 array).
    if batch_tile is None:
        batch_tile = min(256, max(8, _round_up(b, 8)))
    tb = _round_up(batch_tile, 8)
    b_pad = _round_up(b, tb)

    x = features.astype(jnp.float32)
    if b_pad != b:
        x = jnp.pad(x, ((0, b_pad - b), (0, 0)))

    grid = (b_pad // tb,)

    # VMEM budget: weights resident (count x2 for safety) + double-buffered activation
    # tiles. Floor at 32 MiB (<= v7x scoped default), cap below v7x's 64 MiB physical
    # headroom only matters for much larger configs than tested here.
    param_bytes = sum(int(np.prod(p.shape)) * jnp.dtype(p.dtype).itemsize for p in params)
    act_bytes = 4 * tb * max(inp_dim, units, out_pad)
    needed = 2 * param_bytes + 2 * 4 * tb * (inp_dim + out_pad) + 8 * act_bytes + (2 << 20)
    vmem_limit = int(max(32 << 20, min(needed, 56 << 20)))

    in_specs = [pl.BlockSpec((tb, inp_dim), lambda i: (i, 0))]            # streamed per tile
    for w in weights:
        in_specs.append(pl.BlockSpec(w.shape, lambda i: (0, 0)))          # VMEM-resident
    in_specs.append(pl.BlockSpec(vecs.shape, lambda i: (0, 0, 0)))        # VMEM-resident
    in_specs.append(pl.BlockSpec(wm.shape, lambda i: (0, 0)))             # VMEM-resident
    in_specs.append(pl.BlockSpec(bm.shape, lambda i: (0, 0)))             # VMEM-resident
    out_spec = pl.BlockSpec((tb, out_pad), lambda i: (i, 0))              # lane-dense output

    kernel = _make_dense_head_kernel(layer_num)
    mean_pad = pl.pallas_call(
        kernel,
        out_shape=jax.ShapeDtypeStruct((b_pad, out_pad), jnp.float32),
        grid=grid,
        in_specs=in_specs,
        out_specs=out_spec,
        compiler_params=pltpu.CompilerParams(
            dimension_semantics=("parallel",),   # megacore split over batch tiles (v7x)
            vmem_limit_bytes=vmem_limit,
        ),
    )(x, *weights, vecs, wm, bm)

    mean = mean_pad[:b, :out_dim]
    std = jnp.float32(1.0)  # self._std default (not 'learned')
    return mean, std


def init_dense_head_params(key, inp_dim, units, layer_num, out_dim, outscale=1.0,
                           param_dtype=jnp.float32):
    """Deterministic parameter init mirroring weight_init / uniform_weight_init.

    Returns (W_0..W_{L-1} [in,out] param_dtype, vecs (L,3,units) f32, wm_pad (units,out_pad)
    param_dtype, bm_pad (1,out_pad) f32). The mean layer is zero-padded to a lane-dense
    out_pad = round_up(out_dim, 128) width.
    """
    weights = []
    dims = [inp_dim] + [units] * layer_num
    for l in range(layer_num):
        key, k = jax.random.split(key)
        fan_in, fan_out = dims[l], dims[l + 1]
        denoms = (fan_in + fan_out) / 2.0
        std = np.sqrt(1.0 / denoms) / 0.8796256610342398
        # trunc_normal_(mean=0, std=std, a=-2, b=2) (absolute truncation bounds)
        w = jax.random.truncated_normal(
            k, -2.0 / std, 2.0 / std, (fan_in, fan_out), jnp.float32) * std
        weights.append(w.astype(param_dtype))

    # Packed per-layer small vectors: [Linear bias=0, LN weight=1, LN bias=0]; kept f32
    # because all LayerNorm math is done in f32 inside the kernel.
    vec_one = jnp.stack([jnp.zeros((units,), jnp.float32),
                         jnp.ones((units,), jnp.float32),
                         jnp.zeros((units,), jnp.float32)])
    vecs = jnp.broadcast_to(vec_one, (layer_num, 3, units)).copy()

    key, k = jax.random.split(key)
    denoms = (units + out_dim) / 2.0
    limit = np.sqrt(3.0 * outscale / denoms)
    wm = jax.random.uniform(k, (units, out_dim), jnp.float32, -limit, limit)
    out_pad = _round_up(out_dim, 128)
    wm_pad = jnp.zeros((units, out_pad), jnp.float32).at[:, :out_dim].set(wm)
    wm_pad = wm_pad.astype(param_dtype)
    bm_pad = jnp.zeros((1, out_pad), jnp.float32)

    return tuple(weights) + (vecs, wm_pad, bm_pad)


def dense_head_reference(features, params, layer_num, out_dim):
    """Pure-JAX (f32) reference mirroring the torch module."""
    weights = params[:layer_num]
    vecs = params[layer_num]
    wm = params[layer_num + 1][:, :out_dim].astype(jnp.float32)
    bm = params[layer_num + 2][:, :out_dim].astype(jnp.float32)
    h = features.astype(jnp.float32)
    for l in range(layer_num):
        w = weights[l].astype(jnp.float32)
        b, g, beta = vecs[l, 0], vecs[l, 1], vecs[l, 2]
        h = h @ w + b
        mu = h.mean(-1, keepdims=True)
        var = ((h - mu) ** 2).mean(-1, keepdims=True)
        h = (h - mu) / jnp.sqrt(var + 1e-5) * g + beta
        h = h * jax.nn.sigmoid(h)
    return h @ wm + bm


if __name__ == "__main__":
    # DenseHead(inp_dim=64, shape=(1,), layer_num=2, units=128, act='SiLU',
    #           norm='LN', dist='normal', std=1.0, outscale=1.0)
    # B=41 deliberately not a multiple of the batch tile to exercise padding + a
    # multi-step (3-tile) grid.
    B, INP_DIM, UNITS, LAYER_NUM, OUT_DIM = 41, 64, 128, 2, 1

    key = jax.random.PRNGKey(0)
    key, kx = jax.random.split(key)
    features = jax.random.normal(kx, (B, INP_DIM), jnp.float32)

    # --- f32 weights: tight correctness check ------------------------------------
    params_f32 = init_dense_head_params(key, INP_DIM, UNITS, LAYER_NUM, OUT_DIM,
                                        outscale=1.0, param_dtype=jnp.float32)
    fwd_f32 = jax.jit(functools.partial(dense_head_forward, layer_num=LAYER_NUM,
                                        out_dim=OUT_DIM, batch_tile=16))
    mean_f32, std = fwd_f32(features, params_f32)
    mean_f32 = jax.block_until_ready(mean_f32)
    ref_f32 = dense_head_reference(features, params_f32, LAYER_NUM, OUT_DIM)
    np.testing.assert_allclose(np.asarray(mean_f32), np.asarray(ref_f32),
                               rtol=1e-4, atol=1e-5)

    # --- bf16 weights: MXU-friendly path for v6e/v7x (looser tolerance) -----------
    params_bf16 = init_dense_head_params(key, INP_DIM, UNITS, LAYER_NUM, OUT_DIM,
                                         outscale=1.0, param_dtype=jnp.bfloat16)
    fwd_bf16 = jax.jit(functools.partial(dense_head_forward, layer_num=LAYER_NUM,
                                         out_dim=OUT_DIM, batch_tile=16))
    mean_bf16, _ = fwd_bf16(features, params_bf16)
    mean_bf16 = jax.block_until_ready(mean_bf16)
    ref_bf16 = dense_head_reference(features, params_bf16, LAYER_NUM, OUT_DIM)
    np.testing.assert_allclose(np.asarray(mean_bf16), np.asarray(ref_bf16),
                               rtol=5e-2, atol=5e-2)

    print("KERNEL_OK")
</pallas_src>

<mosaic_0001>
module attributes {stable_mosaic.version = 11 : i64} {
  func.func @kernel(%arg0: i32, %arg1: memref<16x64xf32, #tpu.memory_space<vmem>>, %arg2: memref<64x128xf32, #tpu.memory_space<vmem>>, %arg3: memref<128x128xf32, #tpu.memory_space<vmem>>, %arg4: memref<2x3x128xf32, #tpu.memory_space<vmem>>, %arg5: memref<128x128xf32, #tpu.memory_space<vmem>>, %arg6: memref<1x128xf32, #tpu.memory_space<vmem>>, %arg7: memref<16x128xf32, #tpu.memory_space<vmem>>) attributes {dimension_semantics = [#tpu.dimension_semantics<parallel>], iteration_bounds = array<i64: 3>, scalar_prefetch = 0 : i64, scratch_operands = 0 : i64, tpu.core_type = #tpu.core_type<tc>, window_params = [{transform_indices = @transform_0, window_bounds = array<i64: 16, 64>}, {pipeline_mode = #tpu.pipeline_mode<synchronous>, transform_indices = @transform_1, window_bounds = array<i64: 64, 128>}, {pipeline_mode = #tpu.pipeline_mode<synchronous>, transform_indices = @transform_2, window_bounds = array<i64: 128, 128>}, {pipeline_mode = #tpu.pipeline_mode<synchronous>, transform_indices = @transform_3, window_bounds = array<i64: 2, 3, 128>}, {pipeline_mode = #tpu.pipeline_mode<synchronous>, transform_indices = @transform_4, window_bounds = array<i64: 128, 128>}, {pipeline_mode = #tpu.pipeline_mode<synchronous>, transform_indices = @transform_5, window_bounds = array<i64: 1, 128>}, {transform_indices = @transform_6, window_bounds = array<i64: 16, 128>}]} {
    %c0 = arith.constant 0 : index
    %c0_0 = arith.constant 0 : index
    %0 = vector.load %arg1[%c0, %c0_0] : memref<16x64xf32, #tpu.memory_space<vmem>>, vector<16x64xf32>
    %c0_1 = arith.constant 0 : index
    %c0_2 = arith.constant 0 : index
    %1 = vector.load %arg2[%c0_1, %c0_2] : memref<64x128xf32, #tpu.memory_space<vmem>>, vector<64x128xf32>
    %cst = arith.constant dense<0.000000e+00> : vector<16x128xf32>
    %2 = tpu.matmul %0, %1, %cst {dimension_numbers = #tpu.dot_dimension_numbers<[1], [0], [0], [1], [0, 0, 1, 1], [], []>} : vector<16x64xf32>, vector<64x128xf32>, vector<16x128xf32> -> vector<16x128xf32>
    %c0_3 = arith.constant 0 : index
    %c0_4 = arith.constant 0 : index
    %c0_5 = arith.constant 0 : index
    %3 = vector.load %arg4[%c0_3, %c0_4, %c0_5] : memref<2x3x128xf32, #tpu.memory_space<vmem>>, vector<1x3x128xf32>
    %4 = vector.shape_cast %3 : vector<1x3x128xf32> to vector<3x128xf32>
    %5 = vector.extract_strided_slice %4 {offsets = [0, 0], sizes = [1, 128], strides = [1, 1]} : vector<3x128xf32> to vector<1x128xf32>
    %6 = vector.extract_strided_slice %4 {offsets = [1, 0], sizes = [1, 128], strides = [1, 1]} : vector<3x128xf32> to vector<1x128xf32>
    %7 = vector.extract_strided_slice %4 {offsets = [2, 0], sizes = [1, 128], strides = [1, 1]} : vector<3x128xf32> to vector<1x128xf32>
    %8 = vector.broadcast %5 : vector<1x128xf32> to vector<16x128xf32>
    %9 = arith.addf %2, %8 : vector<16x128xf32>
    %cst_6 = arith.constant dense<0.000000e+00> : vector<16xf32>
    %10 = vector.multi_reduction <add>, %9, %cst_6 [1] : vector<16x128xf32> to vector<16xf32>
    %11 = vector.shape_cast %10 : vector<16xf32> to vector<16x1xf32>
    %cst_7 = arith.constant 1.280000e+02 : f32
    %12 = vector.broadcast %cst_7 : f32 to vector<16x1xf32>
    %13 = arith.divf %11, %12 : vector<16x1xf32>
    %14 = arith.mulf %9, %9 : vector<16x128xf32>
    %cst_8 = arith.constant dense<0.000000e+00> : vector<16xf32>
    %15 = vector.multi_reduction <add>, %14, %cst_8 [1] : vector<16x128xf32> to vector<16xf32>
    %16 = vector.shape_cast %15 : vector<16xf32> to vector<16x1xf32>
    %cst_9 = arith.constant 1.280000e+02 : f32
    %17 = vector.broadcast %cst_9 : f32 to vector<16x1xf32>
    %18 = arith.divf %16, %17 : vector<16x1xf32>
    %19 = arith.mulf %13, %13 : vector<16x1xf32>
    %20 = arith.subf %18, %19 : vector<16x1xf32>
    %cst_10 = arith.constant 0.000000e+00 : f32
    %21 = vector.broadcast %cst_10 : f32 to vector<16x1xf32>
    %22 = arith.maximumf %20, %21 : vector<16x1xf32>
    %23 = vector.broadcast %13 : vector<16x1xf32> to vector<16x128xf32>
    %24 = arith.subf %9, %23 : vector<16x128xf32>
    %cst_11 = arith.constant 9.99999974E-6 : f32
    %25 = vector.broadcast %cst_11 : f32 to vector<16x1xf32>
    %26 = arith.addf %22, %25 : vector<16x1xf32>
    %27 = math.rsqrt %26 : vector<16x1xf32>
    %28 = vector.broadcast %27 : vector<16x1xf32> to vector<16x128xf32>
    %29 = arith.mulf %24, %28 : vector<16x128xf32>
    %30 = vector.broadcast %6 : vector<1x128xf32> to vector<16x128xf32>
    %31 = arith.mulf %29, %30 : vector<16x128xf32>
    %32 = vector.broadcast %7 : vector<1x128xf32> to vector<16x128xf32>
    %33 = arith.addf %31, %32 : vector<16x128xf32>
    %34 = arith.negf %33 : vector<16x128xf32>
    %35 = math.exp %34 : vector<16x128xf32>
    %cst_12 = arith.constant 1.000000e+00 : f32
    %36 = vector.broadcast %cst_12 : f32 to vector<16x128xf32>
    %37 = arith.addf %36, %35 : vector<16x128xf32>
    %38 = arith.divf %36, %37 : vector<16x128xf32>
    %39 = arith.mulf %33, %38 : vector<16x128xf32>
    %c0_13 = arith.constant 0 : index
    %c0_14 = arith.constant 0 : index
    %40 = vector.load %arg3[%c0_13, %c0_14] : memref<128x128xf32, #tpu.memory_space<vmem>>, vector<128x128xf32>
    %cst_15 = arith.constant dense<0.000000e+00> : vector<16x128xf32>
    %41 = tpu.matmul %39, %40, %cst_15 {dimension_numbers = #tpu.dot_dimension_numbers<[1], [0], [0], [1], [0, 0, 1, 1], [], []>} : vector<16x128xf32>, vector<128x128xf32>, vector<16x128xf32> -> vector<16x128xf32>
    %c1 = arith.constant 1 : index
    %c0_16 = arith.constant 0 : index
    %c0_17 = arith.constant 0 : index
    %42 = vector.load %arg4[%c1, %c0_16, %c0_17] : memref<2x3x128xf32, #tpu.memory_space<vmem>>, vector<1x3x128xf32>
    %43 = vector.shape_cast %42 : vector<1x3x128xf32> to vector<3x128xf32>
    %44 = vector.extract_strided_slice %43 {offsets = [0, 0], sizes = [1, 128], strides = [1, 1]} : vector<3x128xf32> to vector<1x128xf32>
    %45 = vector.extract_strided_slice %43 {offsets = [1, 0], sizes = [1, 128], strides = [1, 1]} : vector<3x128xf32> to vector<1x128xf32>
    %46 = vector.extract_strided_slice %43 {offsets = [2, 0], sizes = [1, 128], strides = [1, 1]} : vector<3x128xf32> to vector<1x128xf32>
    %47 = vector.broadcast %44 : vector<1x128xf32> to vector<16x128xf32>
    %48 = arith.addf %41, %47 : vector<16x128xf32>
    %cst_18 = arith.constant dense<0.000000e+00> : vector<16xf32>
    %49 = vector.multi_reduction <add>, %48, %cst_18 [1] : vector<16x128xf32> to vector<16xf32>
    %50 = vector.shape_cast %49 : vector<16xf32> to vector<16x1xf32>
    %cst_19 = arith.constant 1.280000e+02 : f32
    %51 = vector.broadcast %cst_19 : f32 to vector<16x1xf32>
    %52 = arith.divf %50, %51 : vector<16x1xf32>
    %53 = arith.mulf %48, %48 : vector<16x128xf32>
    %cst_20 = arith.constant dense<0.000000e+00> : vector<16xf32>
    %54 = vector.multi_reduction <add>, %53, %cst_20 [1] : vector<16x128xf32> to vector<16xf32>
    %55 = vector.shape_cast %54 : vector<16xf32> to vector<16x1xf32>
    %cst_21 = arith.constant 1.280000e+02 : f32
    %56 = vector.broadcast %cst_21 : f32 to vector<16x1xf32>
    %57 = arith.divf %55, %56 : vector<16x1xf32>
    %58 = arith.mulf %52, %52 : vector<16x1xf32>
    %59 = arith.subf %57, %58 : vector<16x1xf32>
    %cst_22 = arith.constant 0.000000e+00 : f32
    %60 = vector.broadcast %cst_22 : f32 to vector<16x1xf32>
    %61 = arith.maximumf %59, %60 : vector<16x1xf32>
    %62 = vector.broadcast %52 : vector<16x1xf32> to vector<16x128xf32>
    %63 = arith.subf %48, %62 : vector<16x128xf32>
    %cst_23 = arith.constant 9.99999974E-6 : f32
    %64 = vector.broadcast %cst_23 : f32 to vector<16x1xf32>
    %65 = arith.addf %61, %64 : vector<16x1xf32>
    %66 = math.rsqrt %65 : vector<16x1xf32>
    %67 = vector.broadcast %66 : vector<16x1xf32> to vector<16x128xf32>
    %68 = arith.mulf %63, %67 : vector<16x128xf32>
    %69 = vector.broadcast %45 : vector<1x128xf32> to vector<16x128xf32>
    %70 = arith.mulf %68, %69 : vector<16x128xf32>
    %71 = vector.broadcast %46 : vector<1x128xf32> to vector<16x128xf32>
    %72 = arith.addf %70, %71 : vector<16x128xf32>
    %73 = arith.negf %72 : vector<16x128xf32>
    %74 = math.exp %73 : vector<16x128xf32>
    %cst_24 = arith.constant 1.000000e+00 : f32
    %75 = vector.broadcast %cst_24 : f32 to vector<16x128xf32>
    %76 = arith.addf %75, %74 : vector<16x128xf32>
    %77 = arith.divf %75, %76 : vector<16x128xf32>
    %78 = arith.mulf %72, %77 : vector<16x128xf32>
    %c0_25 = arith.constant 0 : index
    %c0_26 = arith.constant 0 : index
    %79 = vector.load %arg5[%c0_25, %c0_26] : memref<128x128xf32, #tpu.memory_space<vmem>>, vector<128x128xf32>
    %cst_27 = arith.constant dense<0.000000e+00> : vector<16x128xf32>
    %80 = tpu.matmul %78, %79, %cst_27 {dimension_numbers = #tpu.dot_dimension_numbers<[1], [0], [0], [1], [0, 0, 1, 1], [], []>} : vector<16x128xf32>, vector<128x128xf32>, vector<16x128xf32> -> vector<16x128xf32>
    %c0_28 = arith.constant 0 : index
    %c0_29 = arith.constant 0 : index
    %81 = vector.load %arg6[%c0_28, %c0_29] : memref<1x128xf32, #tpu.memory_space<vmem>>, vector<1x128xf32>
    %82 = vector.broadcast %81 : vector<1x128xf32> to vector<16x128xf32>
    %83 = arith.addf %80, %82 : vector<16x128xf32>
    %c0_30 = arith.constant 0 : index
    %c0_31 = arith.constant 0 : index
    %84 = vector.load %arg7[%c0_30, %c0_31] : memref<16x128xf32, #tpu.memory_space<vmem>>, vector<16x128xf32>
    tpu.vector_store %arg7[%c0_30, %c0_31], %83 {strides = array<i32>} : memref<16x128xf32, #tpu.memory_space<vmem>>, vector<16x128xf32>,
    return
  }
  func.func @transform_0(%arg0: i32) -> (i32, i32) {
    %c0_i32 = arith.constant 0 : i32
    %c0_i32_0 = arith.constant 0 : i32
    return %arg0, %c0_i32 : i32, i32
  }
  func.func @transform_1(%arg0: i32) -> (i32, i32) {
    %c0_i32 = arith.constant 0 : i32
    %c0_i32_0 = arith.constant 0 : i32
    %c0_i32_1 = arith.constant 0 : i32
    return %c0_i32, %c0_i32_0 : i32, i32
  }
  func.func @transform_2(%arg0: i32) -> (i32, i32) {
    %c0_i32 = arith.constant 0 : i32
    %c0_i32_0 = arith.constant 0 : i32
    %c0_i32_1 = arith.constant 0 : i32
    return %c0_i32, %c0_i32_0 : i32, i32
  }
  func.func @transform_3(%arg0: i32) -> (i32, i32, i32) {
    %c0_i32 = arith.constant 0 : i32
    %c0_i32_0 = arith.constant 0 : i32
    %c0_i32_1 = arith.constant 0 : i32
    %c0_i32_2 = arith.constant 0 : i32
    return %c0_i32, %c0_i32_0, %c0_i32_1 : i32, i32, i32
  }
  func.func @transform_4(%arg0: i32) -> (i32, i32) {
    %c0_i32 = arith.constant 0 : i32
    %c0_i32_0 = arith.constant 0 : i32
    %c0_i32_1 = arith.constant 0 : i32
    return %c0_i32, %c0_i32_0 : i32, i32
  }
  func.func @transform_5(%arg0: i32) -> (i32, i32) {
    %c0_i32 = arith.constant 0 : i32
    %c0_i32_0 = arith.constant 0 : i32
    %c0_i32_1 = arith.constant 0 : i32
    return %c0_i32, %c0_i32_0 : i32, i32
  }
  func.func @transform_6(%arg0: i32) -> (i32, i32) {
    %c0_i32 = arith.constant 0 : i32
    %c0_i32_0 = arith.constant 0 : i32
    return %arg0, %c0_i32 : i32, i32
  }
}

</mosaic_0001>

<bundles_post_ra>
// kernel: dense_head_forward.1
= control target key start
LH: loop header
LB: loop body
LE: loop exit
PB: predicated region body
PF: predicated region fallthrough
CT: control target
= control target key end

     0   :  { %11 = vsyncpa [#allocation3], 0  ;;  %s1244_s0 = inlined_call_operand.vmem [shape: f32[48,64], index: 0, kind: input, shape index: {}]   ;;  %s1245_s1 = inlined_call_operand.vmem [shape: f32[64,128], index: 1, kind: input, shape index: {}]   ;;  %s1246_s2 = inlined_call_operand.hbm [shape: f32[128,128], index: 2, kind: input, shape index: {}]   ;;  %s1247_s3 = inlined_call_operand.vmem [shape: f32[2,3,128], index: 3, kind: input, shape index: {}]   ;;  %s1248_s4 = inlined_call_operand.hbm [shape: f32[128,128], index: 4, kind: input, shape index: {}]   ;;  %s1249_s5 = inlined_call_operand.vmem [shape: f32[1,128], index: 5, kind: input, shape index: {}]   ;;  %s1250_s6 = inlined_call_operand.vmem [shape: f32[48,128], index: 6, kind: output, shape index: {}]  }
   0x1   :  { %12 = vsyncpa [#allocation5], 0  ;;  %s1086_s21 = smov 0  }
   0x2 LB: > { %s766_s22 = sadd.s32 4294967295, %s1045_s21   ;;  %p768_p0 = scmp.ge.s32.totalorder %s1045_s21, 1  ;;  %s1045_s21 = sphi %s1086_s21, %s18_s21  }
   0x3   : > { %p180_p1 = scmp.lt.s32.totalorder %s1045_s21, 4  ;;  %s1047_s23 = smov [#allocation2]  }
   0x4   : > { %s195_s24 = sshll.u32 %s1047_s23, 4  ;;  %p1100_p3 = scmp.eq.s32.totalorder %s766_s22, 0  ;;  %s196_s24 = int_to_ptr.vmem [resolvable:$true] %s195_s24 }
   0x5   : > { %p1094_p2 = pnand %p768_p0, %p180_p1  ;;  %s1048_s27 = smov [#allocation4]  }
   0x6   : > { %s211_s28 = sshll.u32 %s1048_s27, 4  ;;  %s990_s30 = scalar_lea.vmem %s196_s24, 2048  ;;  %s212_s28 = int_to_ptr.vmem [resolvable:$true] %s211_s28 }
   0x7   : > { %p932_p4 = pneg %p1094_p2  ;;  %p991_p7 = scmp.ne.s32.totalorder %s196_s24, %s990_s30 }
   0x8   : > { %p998_p10 = scmp.lt.s32.totalorder %s196_s24, %s196_s24  ;;  %p999_p11 = scmp.lt.s32.totalorder %s990_s30, %s990_s30 }
   0x9   : > { %p1108_p5 = pnand %p1100_p3, %p932_p4 }
   0xa   : > { %p1000_p12 = por %p999_p11, %p998_p10 }
   0xb   : > { %p981_p6 = pneg %p1108_p5 }
   0xd   : > { %p993_p8 = pnand %p991_p7, %p981_p6 }
   0xf   : > { %p994_p9 = pneg %p993_p8 }
  0x11   : > { %p1001_p13 = pnand %p1000_p12, %p994_p9 }
  0x13   : > { %1004 = shalt.err (!%p1001_p13)
}
  0x14   : > { %s1049_s7 = smov 128   ;;  %s1050_s8 = smov 8  }
  0x15   : > { %935 = dma.hbm_to_vmem [thread:$0]  (!%p1108_p5), %s1246_s2, 2048, %s196_s24, [#allocation3], %s1049_s7, %s1049_s7, %s1050_s8  }
  0x16   : > { %s1016_s11 = scalar_lea.vmem %s212_s28, 2048  ;;  %p1024_p7 = scmp.lt.s32.totalorder %s212_s28, %s212_s28 }
  0x17   : > { %p1017_p0 = scmp.ne.s32.totalorder %s212_s28, %s1016_s11  ;;  %p1025_p8 = scmp.lt.s32.totalorder %s1016_s11, %s1016_s11 }
  0x19   : > { %p1019_p1 = pnand %p1017_p0, %p981_p6  ;;  %p1026_p10 = por %p1025_p8, %p1024_p7 }
  0x1b   : > { %p1020_p4 = pneg %p1019_p1 }
  0x1d   : > { %p1027_p9 = pnand %p1026_p10, %p1020_p4 }
  0x1f   : > { %1030 = shalt.err (!%p1027_p9)
}
  0x20   : > { %938 = dma.hbm_to_vmem [thread:$0]  (!%p1108_p5), %s1248_s4, 2048, %s212_s28, [#allocation5], %s1049_s7, %s1049_s7, %s1050_s8  }
  0x21   : > { %239 = sbr.rel (%p1094_p2) target bundleno = 1061 (0x425), region = 44 }
  0x26   : > { %1036 = dma.done.wait (%p1100_p3), [#allocation3], 2048  }
  0x27   : > { %1038 = vsyncadd (%p1100_p3), [#allocation3], 4294965248 }
  0x28   : > { %1040 = dma.done.wait (%p1100_p3), [#allocation5], 2048  }
  0x29   : > { %1042 = vsyncadd (%p1100_p3), [#allocation5], 4294965248  ;;  %s775_s14 = sshll.u32 %s766_s22, 1  ;;  %v294_v0 = vld [vmem:[%s1245_s1 + $0x38] sm:$0xff]  ;;  %v293_v1 = vld [vmem:[%s1245_s1 + $0x30] sm:$0xff]  ;;  %vm300_vm0 = vcmask 523264   ;;  %v296_v10 = vlaneseq }
  0x2a   : > { %p274_p6 = scmp.lt.s32.totalorder %s775_s14, 5  ;;  %835 = vmatprep.subr.mxu0 %v294_v0  ;;  %v292_v2 = vld [vmem:[%s1245_s1 + $0x28] sm:$0xff]  ;;  %v291_v4 = vld [vmem:[%s1245_s1 + $0x20] sm:$0xff]  ;;  %v290_v5 = vld [vmem:[%s1245_s1 + $0x18] sm:$0xff] }
  0x2b   : > { %836 = vmatpush3.msra.mxu0 %v294_v0  ;;  %v289_v6 = vld [vmem:[%s1245_s1 + $0x10] sm:$0xff]  ;;  %v288_v7 = vld [vmem:[%s1245_s1 + $0x8] sm:$0xff]  ;;  %v287_v8 = vld [vmem:[%s1245_s1] sm:$0xff]  ;;  %v1176_v11 = vshrl.u32 %v296_v10, 7 }
  0x2c   : > { %s1255_s14 = smov (!%p274_p6, %s775_s14), 5  ;;  %837 = vmatprep.subr.mxu0 %v293_v1  ;;  %v1182_v13 = vld [vmem:[%s1247_s3] sm:$0x7]  ;;  %v452_v21 = vld [vmem:[#allocation2 + $0x78] sm:$0xff]  ;;  %v451_v22 = vld [vmem:[#allocation2 + $0x70] sm:$0xff] }
  0x2d   : > { %s776_s15 = sshll.u32 %s1255_s14, 3  ;;  %838 = vmatpush3.msra.mxu0 %v293_v1  ;;  %v298_v12 = vsub.s32 0, %v1176_v11  ;;  %854 = vmatprep.subr.mxu1 %v452_v21  ;;  %v450_v23 = vld [vmem:[#allocation2 + $0x68] sm:$0xff]  ;;  %v449_v24 = vld [vmem:[#allocation2 + $0x60] sm:$0xff]  ;;  %v448_v25 = vld [vmem:[#allocation2 + $0x58] sm:$0xff]  ;;  %v413_v53 = vsub.s32 1, %v1176_v11 }
  0x2e   : > { %s277_s18 = scalar_lea.vmem %s1244_s0, %s776_s15  ;;  %839 = vmatprep.subr.mxu0 %v292_v2  ;;  %855 = vmatpush3.msra.mxu1 %v452_v21  ;;  %v447_v26 = vld [vmem:[#allocation2 + $0x50] sm:$0xff]  ;;  %v446_v27 = vld [vmem:[#allocation2 + $0x48] sm:$0xff]  ;;  %v445_v28 = vld [vmem:[#allocation2 + $0x40] sm:$0xff]  ;;  %v419_v54 = vsub.s32 2, %v1176_v11  ;;  %s283_s24 = scalar_lea.vmem %s1250_s6, %s776_s15 }
  0x2f   : > { %v285_v3 = vld [vmem:[%s277_s18] sm:$0xff]  ;;  %840 = vmatpush3.msra.mxu0 %v292_v2  ;;  %v286_v9 = vld [vmem:[%s277_s18 + $0x8] sm:$0xff]  ;;  %v299_v15 = vrot.slane %v1182_v13, %v298_v12  ;;  %856 = vmatprep.subr.mxu1 %v451_v22  ;;  %v444_v29 = vld [vmem:[#allocation2 + $0x38] sm:$0xff]  ;;  %v414_v56 = vrot.slane %v1182_v13, %v413_v53 }
  0x30   : > { %851 = vmatprep.mubr.msk.f32.mxu0 %vm300_vm0, %v285_v3  ;;  %841 = vmatprep.subr.mxu0 %v291_v4  ;;  %v443_v30 = vld [vmem:[#allocation2 + $0x30] sm:$0xff]  ;;  %v442_v31 = vld [vmem:[#allocation2 + $0x28] sm:$0xff]  ;;  %v441_v32 = vld [vmem:[#allocation2 + $0x20] sm:$0xff]  ;;  %v420_v59 = vrot.slane %v1182_v13, %v419_v54 }
  0x31   : > { %842 = vmatpush3.msra.mxu0 %v291_v4  ;;  %857 = vmatpush3.msra.mxu1 %v451_v22  ;;  %v440_v33 = vld [vmem:[#allocation2 + $0x18] sm:$0xff]  ;;  %v439_v34 = vld [vmem:[#allocation2 + $0x10] sm:$0xff]  ;;  %v438_v35 = vld [vmem:[#allocation2 + $0x8] sm:$0xff] }
  0x32   : > { %843 = vmatprep.subr.mxu0 %v290_v5  ;;  %858 = vmatprep.subr.mxu1 %v450_v23  ;;  %v437_v36 = vld [vmem:[#allocation2] sm:$0xff] }
  0x33   : > { %844 = vmatpush3.msra.mxu0 %v290_v5  ;;  %859 = vmatpush3.msra.mxu1 %v450_v23  ;;  %v603_v23 = vld [vmem:[#allocation4 + $0x78] sm:$0xff] }
  0x34   : > { %845 = vmatprep.subr.mxu0 %v289_v6  ;;  %860 = vmatprep.subr.mxu1 %v449_v24 }
  0x35   : > { %846 = vmatpush3.msra.mxu0 %v289_v6  ;;  %861 = vmatpush3.msra.mxu1 %v449_v24  ;;  %v601_v24 = vld [vmem:[#allocation4 + $0x68] sm:$0xff] }
  0x36   : > { %847 = vmatprep.subr.mxu0 %v288_v7  ;;  %862 = vmatprep.subr.mxu1 %v448_v25 }
  0x37   : > { %848 = vmatpush3.msra.mxu0 %v288_v7  ;;  %863 = vmatpush3.msra.mxu1 %v448_v25  ;;  %v600_v25 = vld [vmem:[#allocation4 + $0x60] sm:$0xff] }
  0x38   : > { %849 = vmatprep.subr.mxu0 %v287_v8  ;;  %864 = vmatprep.subr.mxu1 %v447_v26 }
  0x39   : > { %850 = vmatpush3.msra.mxu0 %v287_v8  ;;  %865 = vmatpush3.msra.mxu1 %v447_v26  ;;  %v599_v26 = vld [vmem:[#allocation4 + $0x58] sm:$0xff] }
  0x3a   : > { %852 = vmatmul.mubr.msk.f32.vlgmr.msra.gmra.mxu0 %vm300_vm0, %v286_v9  ;;  %866 = vmatprep.subr.mxu1 %v446_v27 }
  0x3b   : > { %867 = vmatpush3.msra.mxu1 %v446_v27  ;;  %889 = vmatprep.subr.mxu0 %v603_v23  ;;  %v598_v27 = vld [vmem:[#allocation4 + $0x50] sm:$0xff] }
  0x3c   : > { %868 = vmatprep.subr.mxu1 %v445_v28  ;;  %890 = vmatpush3.msra.mxu0 %v603_v23 }
  0x3d   : > { %869 = vmatpush3.msra.mxu1 %v445_v28  ;;  %v597_v28 = vld [vmem:[#allocation4 + $0x48] sm:$0xff] }
  0x3e   : > { %870 = vmatprep.subr.mxu1 %v444_v29 }
  0x3f   : > { %871 = vmatpush3.msra.mxu1 %v444_v29  ;;  %v596_v29 = vld [vmem:[#allocation4 + $0x40] sm:$0xff] }
  0x40   : > { %872 = vmatprep.subr.mxu1 %v443_v30 }
  0x41   : > { %873 = vmatpush3.msra.mxu1 %v443_v30  ;;  %v595_v30 = vld [vmem:[#allocation4 + $0x38] sm:$0xff] }
  0x42   : > { %874 = vmatprep.subr.mxu1 %v442_v31 }
  0x43   : > { %875 = vmatpush3.msra.mxu1 %v442_v31  ;;  %v594_v31 = vld [vmem:[#allocation4 + $0x30] sm:$0xff] }
  0x44   : > { %876 = vmatprep.subr.mxu1 %v441_v32 }
  0x45   : > { %877 = vmatpush3.msra.mxu1 %v441_v32  ;;  %v593_v32 = vld [vmem:[#allocation4 + $0x28] sm:$0xff] }
  0x46   : > { %878 = vmatprep.subr.mxu1 %v440_v33 }
  0x47   : > { %879 = vmatpush3.msra.mxu1 %v440_v33  ;;  %v592_v33 = vld [vmem:[#allocation4 + $0x20] sm:$0xff] }
  0x48   : > { %880 = vmatprep.subr.mxu1 %v439_v34 }
  0x49   : > { %881 = vmatpush3.msra.mxu1 %v439_v34  ;;  %v591_v34 = vld [vmem:[#allocation4 + $0x18] sm:$0xff] }
  0x4a   : > { %882 = vmatprep.subr.mxu1 %v438_v35 }
  0x4b   : > { %883 = vmatpush3.msra.mxu1 %v438_v35  ;;  %v590_v35 = vld [vmem:[#allocation4 + $0x10] sm:$0xff] }
  0x4c   : > { %884 = vmatprep.subr.mxu1 %v437_v36 }
  0x4d   : > { %885 = vmatpush3.msra.mxu1 %v437_v36  ;;  %v589_v36 = vld [vmem:[#allocation4 + $0x8] sm:$0xff] }
  0xfa   : > { %v853_v14 = vpop.f32.mrf.mxu0 }
  0xfb   : > { %v1189_v18 = vadd.f32 %v853_v14, %v299_v15 }
  0xfc   : > { %v373_v16 = vpop.f32.mrf.mxu0 }
  0xfd   : > { %v1187_v17 = vadd.f32 %v373_v16, %v299_v15  ;;  %v390_v20 = vmul.f32 %v1189_v18, %v1189_v18  ;;  %v1210_v15 = vld [vmem:[%s1247_s3 + $0x4] sm:$0x7] }
  0xfe   : > { %v458_v16 = vrot.slane %v1210_v15, %v298_v12  ;;  %v602_v12 = vld [vmem:[#allocation4 + $0x70] sm:$0xff] }
  0xff   : > { %382 = vadd.xlane.f32.xlu0 %v1187_v17  ;;  %v389_v19 = vmul.f32 %v1187_v17, %v1187_v17  ;;  %891 = vmatprep.subr.mxu0 %v602_v12 }
 0x100   : > { %892 = vmatpush3.msra.mxu0 %v602_v12 }
 0x101   : > { %391 = vadd.xlane.f32.xlu1 %v389_v19  ;;  %893 = vmatprep.subr.mxu0 %v601_v24 }
 0x102   : > { %894 = vmatpush3.msra.mxu0 %v601_v24 }
 0x103   : > { %384 = vadd.xlane.f32.xlu0 %v1189_v18  ;;  %895 = vmatprep.subr.mxu0 %v600_v25 }
 0x104   : > { %896 = vmatpush3.msra.mxu0 %v600_v25 }
 0x105   : > { %393 = vadd.xlane.f32.xlu1 %v390_v20  ;;  %897 = vmatprep.subr.mxu0 %v599_v26 }
 0x106   : > { %898 = vmatpush3.msra.mxu0 %v599_v26 }
 0x107   : > { %899 = vmatprep.subr.mxu0 %v598_v27 }
 0x108   : > { %900 = vmatpush3.msra.mxu0 %v598_v27 }
 0x109   : > { %901 = vmatprep.subr.mxu0 %v597_v28 }
 0x10a   : > { %902 = vmatpush3.msra.mxu0 %v597_v28 }
 0x10b   : > { %903 = vmatprep.subr.mxu0 %v596_v29 }
 0x10c   : > { %904 = vmatpush3.msra.mxu0 %v596_v29 }
 0x10d   : > { %905 = vmatprep.subr.mxu0 %v595_v30 }
 0x10e   : > { %906 = vmatpush3.msra.mxu0 %v595_v30 }
 0x10f   : > { %907 = vmatprep.subr.mxu0 %v594_v31 }
 0x110   : > { %908 = vmatpush3.msra.mxu0 %v594_v31 }
 0x111   : > { %909 = vmatprep.subr.mxu0 %v593_v32 }
 0x112   : > { %910 = vmatpush3.msra.mxu0 %v593_v32 }
 0x113   : > { %911 = vmatprep.subr.mxu0 %v592_v33 }
 0x114   : > { %912 = vmatpush3.msra.mxu0 %v592_v33 }
 0x115   : > { %913 = vmatprep.subr.mxu0 %v591_v34 }
 0x116   : > { %914 = vmatpush3.msra.mxu0 %v591_v34 }
 0x117   : > { %915 = vmatprep.subr.mxu0 %v590_v35 }
 0x118   : > { %916 = vmatpush3.msra.mxu0 %v590_v35 }
 0x119   : > { %917 = vmatprep.subr.mxu0 %v589_v36 }
 0x11a   : > { %918 = vmatpush3.msra.mxu0 %v589_v36 }
 0x188   : > { %v383_v37 = vpop.xlane.xlu0 %382 }
 0x189   : > { %v387_v38 = vmul.f32 0.0078125, %v383_v37  ;;  %v588_v37 = vld [vmem:[#allocation4] sm:$0xff] }
 0x18a   : > { %v392_v39 = vpop.xlane.xlu1 %391  ;;  %919 = vmatprep.subr.mxu0 %v588_v37 }
 0x18b   : > { %v397_v40 = vmul.f32 %v387_v38, %v387_v38  ;;  %v395_v41 = vmul.f32 0.0078125, %v392_v39  ;;  %v403_v55 = vsub.f32 %v1187_v17, %v387_v38  ;;  %920 = vmatpush3.msra.mxu0 %v588_v37 }
 0x18c   : > { %v385_v42 = vpop.xlane.xlu0 %384 }
 0x18d   : > { %v399_v43 = vsub.f32 %v395_v41, %v397_v40  ;;  %v388_v44 = vmul.f32 0.0078125, %v385_v42 }
 0x18e   : > { %v394_v45 = vpop.xlane.xlu1 %393 }
 0x18f   : > { %v401_v46 = vmax.f32 %v399_v43, 0.0  ;;  %v398_v47 = vmul.f32 %v388_v44, %v388_v44  ;;  %v396_v48 = vmul.f32 0.0078125, %v394_v45  ;;  %v404_v60 = vsub.f32 %v1189_v18, %v388_v44 }
 0x191   : > { %v405_v49 = vadd.f32 1e-05, %v401_v46  ;;  %v400_v50 = vsub.f32 %v396_v48, %v398_v47 }
 0x193   : > { %955 = vrsqrt.f32 %v405_v49  ;;  %v402_v51 = vmax.f32 %v400_v50, 0.0 }
 0x195   : > { %v406_v52 = vadd.f32 1e-05, %v402_v51 }
 0x197   : > { %957 = vrsqrt.f32 %v406_v52 }
 0x1a0   : > { %v956_v57 = vpop.eup %955 }
 0x1a1   : > { %v409_v58 = vmul.f32 %v956_v57, %v403_v55 }
 0x1a3   : > { %v415_v61 = vmul.f32 %v414_v56, %v409_v58 }
 0x1a4   : > { %v958_v62 = vpop.eup %957 }
 0x1a5   : > { %v421_v63 = vadd.f32 %v420_v59, %v415_v61  ;;  %v410_v0 = vmul.f32 %v958_v62, %v404_v60 }
 0x1a7   : > { %v781_v1 = vmul.f32 -1.442695, %v421_v63  ;;  %v416_v2 = vmul.f32 %v414_v56, %v410_v0  ;;  %v565_v56 = vrot.slane %v1210_v15, %v413_v53 }
 0x1a9   : > { %959 = vpow2.f32 %v781_v1  ;;  %v422_v3 = vadd.f32 %v420_v59, %v416_v2  ;;  %v571_v59 = vrot.slane %v1210_v15, %v419_v54 }
 0x1ab   : > { %v782_v4 = vmul.f32 -1.442695, %v422_v3 }
 0x1ad   : > { %961 = vpow2.f32 %v782_v4 }
 0x1b6   : > { %v960_v5 = vpop.eup %959 }
 0x1b7   : > { %v429_v6 = vadd.f32 1.0, %v960_v5 }
 0x1b9   : > { %963 = vrcp.f32 %v429_v6 }
 0x1ba   : > { %v962_v7 = vpop.eup %961 }
 0x1bb   : > { %v430_v8 = vadd.f32 1.0, %v962_v7 }
 0x1bd   : > { %965 = vrcp.f32 %v430_v8 }
 0x1c6   : > { %v964_v9 = vpop.eup %963 }
 0x1c7   : > { %v435_v10 = vmul.f32 %v964_v9, %v421_v63 }
 0x1c9   : > { %886 = vmatprep.mubr.f32.mxu1 %v435_v10 }
 0x1ca   : > { %v966_v13 = vpop.eup %965 }
 0x1cb   : > { %v436_v14 = vmul.f32 %v966_v13, %v422_v3 }
 0x1cd   : > { %887 = vmatmul.mubr.f32.vlgmr.msra.gmra.mxu1 %v436_v14  ;;  %v786_v14 = vld [vmem:[%s1249_s5] ss:$0 sm:$0xff] }
 0x28d   : > { %v888_v17 = vpop.f32.mrf.mxu1 }
 0x28e   : > { %v1215_v18 = vadd.f32 %v888_v17, %v458_v16 }
 0x28f   : > { %v525_v19 = vpop.f32.mrf.mxu1 }
 0x290   : > { %v1217_v20 = vadd.f32 %v525_v19, %v458_v16  ;;  %536 = vadd.xlane.f32.xlu1 %v1215_v18  ;;  %v541_v21 = vmul.f32 %v1215_v18, %v1215_v18 }
 0x292   : > { %534 = vadd.xlane.f32.xlu0 %v1217_v20  ;;  %v540_v22 = vmul.f32 %v1217_v20, %v1217_v20 }
 0x294   : > { %544 = vadd.xlane.f32.xlu1 %v541_v21 }
 0x296   : > { %542 = vadd.xlane.f32.xlu0 %v540_v22 }
 0x319   : > { %v537_v38 = vpop.xlane.xlu1 %536 }
 0x31a   : > { %v539_v39 = vmul.f32 0.0078125, %v537_v38 }
 0x31b   : > { %v535_v40 = vpop.xlane.xlu0 %534 }
 0x31c   : > { %v538_v41 = vmul.f32 0.0078125, %v535_v40  ;;  %v549_v43 = vmul.f32 %v539_v39, %v539_v39  ;;  %v555_v57 = vsub.f32 %v1215_v18, %v539_v39 }
 0x31d   : > { %v545_v42 = vpop.xlane.xlu1 %544 }
 0x31e   : > { %v547_v44 = vmul.f32 0.0078125, %v545_v42  ;;  %v548_v46 = vmul.f32 %v538_v41, %v538_v41  ;;  %v554_v60 = vsub.f32 %v1217_v20, %v538_v41 }
 0x31f   : > { %v543_v45 = vpop.xlane.xlu0 %542 }
 0x320   : > { %v551_v47 = vsub.f32 %v547_v44, %v549_v43  ;;  %v546_v48 = vmul.f32 0.0078125, %v543_v45 }
 0x322   : > { %v553_v49 = vmax.f32 %v551_v47, 0.0  ;;  %v550_v50 = vsub.f32 %v546_v48, %v548_v46 }
 0x324   : > { %v557_v51 = vadd.f32 1e-05, %v553_v49  ;;  %v552_v52 = vmax.f32 %v550_v50, 0.0 }
 0x326   : > { %967 = vrsqrt.f32 %v557_v51  ;;  %v556_v55 = vadd.f32 1e-05, %v552_v52 }
 0x328   : > { %969 = vrsqrt.f32 %v556_v55 }
 0x333   : > { %v968_v58 = vpop.eup %967 }
 0x334   : > { %v561_v61 = vmul.f32 %v968_v58, %v555_v57 }
 0x335   : > { %v970_v62 = vpop.eup %969 }
 0x336   : > { %v560_v63 = vmul.f32 %v970_v62, %v554_v60  ;;  %v567_v0 = vmul.f32 %v565_v56, %v561_v61 }
 0x338   : > { %v566_v1 = vmul.f32 %v565_v56, %v560_v63  ;;  %v573_v2 = vadd.f32 %v571_v59, %v567_v0 }
 0x33a   : > { %v572_v3 = vadd.f32 %v571_v59, %v566_v1  ;;  %v785_v4 = vmul.f32 -1.442695, %v573_v2 }
 0x33c   : > { %v784_v5 = vmul.f32 -1.442695, %v572_v3  ;;  %971 = vpow2.f32 %v785_v4 }
 0x33e   : > { %973 = vpow2.f32 %v784_v5 }
 0x349   : > { %v972_v53 = vpop.eup %971 }
 0x34a   : > { %v581_v6 = vadd.f32 1.0, %v972_v53 }
 0x34b   : > { %v974_v7 = vpop.eup %973 }
 0x34c   : > { %v580_v11 = vadd.f32 1.0, %v974_v7  ;;  %975 = vrcp.f32 %v581_v6 }
 0x34e   : > { %977 = vrcp.f32 %v580_v11 }
 0x359   : > { %v976_v54 = vpop.eup %975 }
 0x35a   : > { %v587_v10 = vmul.f32 %v976_v54, %v573_v2 }
 0x35b   : > { %v978_v8 = vpop.eup %977 }
 0x35c   : > { %v586_v9 = vmul.f32 %v978_v8, %v572_v3 }
 0x35e   : > { %921 = vmatprep.mubr.f32.mxu0 %v586_v9 }
 0x35f   : > { %922 = vmatmul.mubr.f32.vlgmr.msra.gmra.mxu0 %v587_v10 }
 0x41f   : > { %v923_v13 = vpop.f32.mrf.mxu0 }
 0x420   : > { %v683_v17 = vadd.f32 %v923_v13, %v786_v14 }
 0x421   : > { %v677_v15 = vpop.f32.mrf.mxu0 }
 0x422   : > { %v678_v16 = vadd.f32 %v786_v14, %v677_v15  ;;  %687 = vst [vmem:[%s283_s24 + $0x8] sm:$0xff] %v683_v17 }
 0x424   : > { %686 = vst [vmem:[%s283_s24] sm:$0xff] %v678_v16 }
 0x425 PF: > { %s18_s21 = sadd.s32 1, %s1045_s21  }
 0x426   : > { %p15_p2 = scmp.ge.s32.totalorder %s18_s21, 5  }
 0x428   :  { %17 = sbr.rel (!%p15_p2) target bundleno = 2 (0x2), region = 84 }
 0x42d   :  { %710 = vsyncpa [#allocation3], 1 }
 0x42e   :  { %712 = vsyncpa [#allocation3 + $0x1], 1 }
 0x42f   :  { %713 = vsyncpa [#allocation5], 1 }

</bundles_post_ra>
